<compile_context>
chip_gen: v7x
topology: tpu7x:2x2x1
jax: 0.10.0
libtpu: 0.0.40
codegen_flags: <defaults>
</compile_context>

<pallas_src>
import functools

import jax
import jax.numpy as jnp
from jax.experimental import pallas as pl
from jax.experimental.pallas import tpu as pltpu

HIDDEN = 256


def _round_up(n, m):
    return ((n + m - 1) // m) * m


def qnet_kernel(xa_ref, w1_ref, b1_ref, w2_ref, b2_ref, w3_ref, b3_ref, out_ref):
    # Layer 1: one fused MXU dot over cat([x, a]); bf16 in, f32 accumulate.
    h1 = jnp.dot(xa_ref[...], w1_ref[...], preferred_element_type=jnp.float32)
    h1 = jnp.maximum(h1 + b1_ref[...], 0.0)              # f32 bias + ReLU (VPU)

    # Layer 2: 256 -> 256 (dominant matmul), bf16 in / f32 accumulate.
    h2 = jnp.dot(h1.astype(jnp.bfloat16), w2_ref[...],
                 preferred_element_type=jnp.float32)
    h2 = jnp.maximum(h2 + b2_ref[...], 0.0)

    # Layer 3: 256 -> 1 as VPU multiply + lane reduction, then repack the
    # per-row scalars into a lane-dense (tb//128, 128) slab for the store.
    q = jnp.sum(h2 * w3_ref[...], axis=-1, keepdims=True)        # (tb, 1) f32
    out_ref[...] = q.reshape(out_ref.shape) + b3_ref[0, 0]


def prepare_params(params):
    """One-time conversion from PyTorch-layout f32 params to the kernel layout.

    Input layout matches nn.Linear: W (out, in), b (out,). Done once, not per call.
    """
    w1, b1, w2, b2, w3, b3 = params
    return {
        "w1": jnp.asarray(w1, jnp.float32).T.astype(jnp.bfloat16),   # (obs+act, 256) bf16
        "b1": jnp.asarray(b1, jnp.float32).reshape(1, HIDDEN),       # (1, 256) f32
        "w2": jnp.asarray(w2, jnp.float32).T.astype(jnp.bfloat16),   # (256, 256) bf16
        "b2": jnp.asarray(b2, jnp.float32).reshape(1, HIDDEN),       # (1, 256) f32
        "w3": jnp.asarray(w3, jnp.float32).reshape(1, HIDDEN),       # (1, 256) f32
        "b3": jnp.asarray(b3, jnp.float32).reshape(1, 1),            # (1, 1)   f32
    }


@functools.partial(jax.jit, static_argnames=("block_batch",))
def qnetwork_forward(x, a, prepared, *, block_batch=2048):
    """x: (B, obs_dim) f32, a: (B, act_dim) f32 -> (B, 1) f32."""
    B = x.shape[0]
    d_in = x.shape[1] + a.shape[1]

    # Batch tile: multiple of 128, capped at block_batch.
    tb = _round_up(min(block_batch, _round_up(B, 128)), 128)
    b_pad = _round_up(B, tb)
    # Prefer >= 2 grid steps (when the tile can still stay a multiple of 128)
    # so the "parallel" batch axis can be sharded across v7x's two TensorCores.
    if b_pad // tb == 1 and tb % 256 == 0:
        tb //= 2
        b_pad = _round_up(B, tb)

    # Single fused producer op: concat + bf16 cast + batch pad (XLA fuses this
    # into one pass over the tiny inputs; no separate cast pass per stream).
    xa = jnp.concatenate([x, a], axis=1).astype(jnp.bfloat16)
    xa = jnp.pad(xa, ((0, b_pad - B), (0, 0)))

    # Weights/biases: same block every grid step -> stay resident in VMEM.
    resident = lambda i: (0, 0)

    out = pl.pallas_call(
        qnet_kernel,
        out_shape=jax.ShapeDtypeStruct((b_pad // 128, 128), jnp.float32),
        grid=(b_pad // tb,),
        in_specs=[
            pl.BlockSpec((tb, d_in), lambda i: (i, 0)),      # xa tile (streamed)
            pl.BlockSpec((d_in, HIDDEN), resident),          # W1.T (merged x|a rows)
            pl.BlockSpec((1, HIDDEN), resident),             # b1
            pl.BlockSpec((HIDDEN, HIDDEN), resident),        # W2.T
            pl.BlockSpec((1, HIDDEN), resident),             # b2
            pl.BlockSpec((1, HIDDEN), resident),             # W3 row
            pl.BlockSpec((1, 1), resident),                  # b3
        ],
        out_specs=pl.BlockSpec((tb // 128, 128), lambda i: (i, 0)),   # lane-dense q slab
        compiler_params=pltpu.CompilerParams(
            dimension_semantics=("parallel",),
            vmem_limit_bytes=32 * 1024 * 1024),
    )(xa, prepared["w1"], prepared["b1"], prepared["w2"], prepared["b2"],
      prepared["w3"], prepared["b3"])

    # Undo the lane-dense packing (row-major: out[r, c] == q[r*128 + c]).
    return out.reshape(b_pad, 1)[:B]


def init_params(key, obs_dim, act_dim):
    """Deterministic init matching PyTorch Linear shapes: W (out, in), b (out,)."""
    d_in = obs_dim + act_dim
    k1, k2, k3, k4, k5, k6 = jax.random.split(key, 6)

    def uniform(k, shape, fan_in):
        bound = 1.0 / jnp.sqrt(fan_in)
        return jax.random.uniform(k, shape, jnp.float32, -bound, bound)

    w1 = uniform(k1, (HIDDEN, d_in), d_in)
    b1 = uniform(k2, (HIDDEN,), d_in)
    w2 = uniform(k3, (HIDDEN, HIDDEN), HIDDEN)
    b2 = uniform(k4, (HIDDEN,), HIDDEN)
    w3 = uniform(k5, (1, HIDDEN), HIDDEN)
    b3 = uniform(k6, (1,), HIDDEN)
    return (w1, b1, w2, b2, w3, b3)


def reference_forward(x, a, params):
    """Pure-JAX f32 reference (matches the PyTorch module semantics)."""
    w1, b1, w2, b2, w3, b3 = params
    xa = jnp.concatenate([x, a], axis=1)
    h1 = jnp.maximum(xa @ w1.T + b1, 0.0)
    h2 = jnp.maximum(h1 @ w2.T + b2, 0.0)
    return h2 @ w3.T + b3


def reference_forward_bf16(x, a, params):
    """Pure-JAX reference mirroring the kernel's bf16-in / f32-accumulate arithmetic."""
    w1, b1, w2, b2, w3, b3 = params
    xa = jnp.concatenate([x, a], axis=1).astype(jnp.bfloat16)
    h1 = jnp.dot(xa, w1.T.astype(jnp.bfloat16),
                 preferred_element_type=jnp.float32) + b1
    h1 = jnp.maximum(h1, 0.0)
    h2 = jnp.dot(h1.astype(jnp.bfloat16), w2.T.astype(jnp.bfloat16),
                 preferred_element_type=jnp.float32) + b2
    h2 = jnp.maximum(h2, 0.0)
    return jnp.sum(h2 * w3, axis=-1, keepdims=True) + b3


if __name__ == "__main__":
    key = jax.random.PRNGKey(0)
    k_p, k_x, k_a = jax.random.split(key, 3)

    batch, obs_dim, act_dim = 2, 8, 4
    params = init_params(k_p, obs_dim, act_dim)
    prepared = prepare_params(params)

    x = jax.random.normal(k_x, (batch, obs_dim), jnp.float32)
    a = jax.random.normal(k_a, (batch, act_dim), jnp.float32)

    out = qnetwork_forward(x, a, prepared)
    out = jax.block_until_ready(out)
    assert out.shape == (batch, 1)

    ref_bf16 = reference_forward_bf16(x, a, params)   # same arithmetic as kernel
    ref_f32 = reference_forward(x, a, params)         # exact module semantics
    assert jnp.allclose(out, ref_bf16, atol=2e-3, rtol=2e-3), (out, ref_bf16)
    assert jnp.allclose(out, ref_f32, atol=5e-2, rtol=5e-2), (out, ref_f32)

    # Secondary check: multi-step grid with a padded final tile (B not a multiple of TB).
    k_x2, k_a2 = jax.random.split(jax.random.PRNGKey(1), 2)
    batch2 = 300
    x2 = jax.random.normal(k_x2, (batch2, obs_dim), jnp.float32)
    a2 = jax.random.normal(k_a2, (batch2, act_dim), jnp.float32)
    out2 = jax.block_until_ready(qnetwork_forward(x2, a2, prepared, block_batch=128))
    ref2 = reference_forward_bf16(x2, a2, params)
    assert out2.shape == (batch2, 1)
    assert jnp.allclose(out2, ref2, atol=2e-3, rtol=2e-3)

    # Third check: larger batch exercising the >=2-step "parallel" grid and the
    # multi-row lane-dense output slab (tb // 128 > 1).
    k_x3, k_a3 = jax.random.split(jax.random.PRNGKey(2), 2)
    batch3 = 1024
    x3 = jax.random.normal(k_x3, (batch3, obs_dim), jnp.float32)
    a3 = jax.random.normal(k_a3, (batch3, act_dim), jnp.float32)
    out3 = jax.block_until_ready(qnetwork_forward(x3, a3, prepared))
    ref3 = reference_forward_bf16(x3, a3, params)
    assert out3.shape == (batch3, 1)
    assert jnp.allclose(out3, ref3, atol=2e-3, rtol=2e-3)

    print("KERNEL_OK")
</pallas_src>

<mosaic_0001>
module attributes {stable_mosaic.version = 11 : i64} {
  func.func @qnet_kernel(%arg0: i32, %arg1: memref<128x12xbf16, #tpu.memory_space<vmem>>, %arg2: memref<12x256xbf16, #tpu.memory_space<vmem>>, %arg3: memref<1x256xf32, #tpu.memory_space<vmem>>, %arg4: memref<256x256xbf16, #tpu.memory_space<vmem>>, %arg5: memref<1x256xf32, #tpu.memory_space<vmem>>, %arg6: memref<1x256xf32, #tpu.memory_space<vmem>>, %arg7: memref<1x1xf32, #tpu.memory_space<vmem>>, %arg8: memref<1x128xf32, #tpu.memory_space<vmem>>) attributes {dimension_semantics = [#tpu.dimension_semantics<parallel>], iteration_bounds = array<i64: 1>, scalar_prefetch = 0 : i64, scratch_operands = 0 : i64, tpu.core_type = #tpu.core_type<tc>, window_params = [{transform_indices = @transform_0, window_bounds = array<i64: 128, 12>}, {pipeline_mode = #tpu.pipeline_mode<synchronous>, transform_indices = @transform_1, window_bounds = array<i64: 12, 256>}, {pipeline_mode = #tpu.pipeline_mode<synchronous>, transform_indices = @transform_2, window_bounds = array<i64: 1, 256>}, {pipeline_mode = #tpu.pipeline_mode<synchronous>, transform_indices = @transform_3, window_bounds = array<i64: 256, 256>}, {pipeline_mode = #tpu.pipeline_mode<synchronous>, transform_indices = @transform_4, window_bounds = array<i64: 1, 256>}, {pipeline_mode = #tpu.pipeline_mode<synchronous>, transform_indices = @transform_5, window_bounds = array<i64: 1, 256>}, {pipeline_mode = #tpu.pipeline_mode<synchronous>, transform_indices = @transform_6, window_bounds = array<i64: 1, 1>}, {transform_indices = @transform_7, window_bounds = array<i64: 1, 128>}]} {
    %c0 = arith.constant 0 : index
    %c0_0 = arith.constant 0 : index
    %0 = vector.load %arg1[%c0, %c0_0] : memref<128x12xbf16, #tpu.memory_space<vmem>>, vector<128x12xbf16>
    %c0_1 = arith.constant 0 : index
    %c0_2 = arith.constant 0 : index
    %1 = vector.load %arg2[%c0_1, %c0_2] : memref<12x256xbf16, #tpu.memory_space<vmem>>, vector<12x256xbf16>
    %cst = arith.constant dense<0.000000e+00> : vector<128x256xf32>
    %2 = tpu.matmul %0, %1, %cst {dimension_numbers = #tpu.dot_dimension_numbers<[1], [0], [0], [1], [0, 0, 1, 1], [], []>} : vector<128x12xbf16>, vector<12x256xbf16>, vector<128x256xf32> -> vector<128x256xf32>
    %c0_3 = arith.constant 0 : index
    %c0_4 = arith.constant 0 : index
    %3 = vector.load %arg3[%c0_3, %c0_4] : memref<1x256xf32, #tpu.memory_space<vmem>>, vector<1x256xf32>
    %4 = vector.broadcast %3 : vector<1x256xf32> to vector<128x256xf32>
    %5 = arith.addf %2, %4 : vector<128x256xf32>
    %cst_5 = arith.constant 0.000000e+00 : f32
    %6 = vector.broadcast %cst_5 : f32 to vector<128x256xf32>
    %7 = arith.maximumf %5, %6 : vector<128x256xf32>
    %8 = arith.truncf %7 : vector<128x256xf32> to vector<128x256xbf16>
    %c0_6 = arith.constant 0 : index
    %c0_7 = arith.constant 0 : index
    %9 = vector.load %arg4[%c0_6, %c0_7] : memref<256x256xbf16, #tpu.memory_space<vmem>>, vector<256x256xbf16>
    %cst_8 = arith.constant dense<0.000000e+00> : vector<128x256xf32>
    %10 = tpu.matmul %8, %9, %cst_8 {dimension_numbers = #tpu.dot_dimension_numbers<[1], [0], [0], [1], [0, 0, 1, 1], [], []>} : vector<128x256xbf16>, vector<256x256xbf16>, vector<128x256xf32> -> vector<128x256xf32>
    %c0_9 = arith.constant 0 : index
    %c0_10 = arith.constant 0 : index
    %11 = vector.load %arg5[%c0_9, %c0_10] : memref<1x256xf32, #tpu.memory_space<vmem>>, vector<1x256xf32>
    %12 = vector.broadcast %11 : vector<1x256xf32> to vector<128x256xf32>
    %13 = arith.addf %10, %12 : vector<128x256xf32>
    %cst_11 = arith.constant 0.000000e+00 : f32
    %14 = vector.broadcast %cst_11 : f32 to vector<128x256xf32>
    %15 = arith.maximumf %13, %14 : vector<128x256xf32>
    %c0_12 = arith.constant 0 : index
    %c0_13 = arith.constant 0 : index
    %16 = vector.load %arg6[%c0_12, %c0_13] : memref<1x256xf32, #tpu.memory_space<vmem>>, vector<1x256xf32>
    %17 = vector.broadcast %16 : vector<1x256xf32> to vector<128x256xf32>
    %18 = arith.mulf %15, %17 : vector<128x256xf32>
    %cst_14 = arith.constant dense<0.000000e+00> : vector<128xf32>
    %19 = vector.multi_reduction <add>, %18, %cst_14 [1] : vector<128x256xf32> to vector<128xf32>
    %20 = vector.shape_cast %19 : vector<128xf32> to vector<128x1xf32>
    %21 = vector.shape_cast %20 : vector<128x1xf32> to vector<1x128xf32>
    %c0_15 = arith.constant 0 : index
    %c0_16 = arith.constant 0 : index
    %22 = vector.load %arg7[%c0_15, %c0_16] : memref<1x1xf32, #tpu.memory_space<vmem>>, vector<1x1xf32>
    %23 = vector.extract %22[0, 0] : f32 from vector<1x1xf32>
    %24 = vector.broadcast %23 : f32 to vector<1x128xf32>
    %25 = arith.addf %21, %24 : vector<1x128xf32>
    %c0_17 = arith.constant 0 : index
    %c0_18 = arith.constant 0 : index
    %26 = vector.load %arg8[%c0_17, %c0_18] : memref<1x128xf32, #tpu.memory_space<vmem>>, vector<1x128xf32>
    tpu.vector_store %arg8[%c0_17, %c0_18], %25 {strides = array<i32>} : memref<1x128xf32, #tpu.memory_space<vmem>>, vector<1x128xf32>,
    return
  }
  func.func @transform_0(%arg0: i32) -> (i32, i32) {
    %c0_i32 = arith.constant 0 : i32
    %c0_i32_0 = arith.constant 0 : i32
    return %arg0, %c0_i32 : i32, i32
  }
  func.func @transform_1(%arg0: i32) -> (i32, i32) {
    %c0_i32 = arith.constant 0 : i32
    %c0_i32_0 = arith.constant 0 : i32
    %c0_i32_1 = arith.constant 0 : i32
    return %c0_i32, %c0_i32_0 : i32, i32
  }
  func.func @transform_2(%arg0: i32) -> (i32, i32) {
    %c0_i32 = arith.constant 0 : i32
    %c0_i32_0 = arith.constant 0 : i32
    %c0_i32_1 = arith.constant 0 : i32
    return %c0_i32, %c0_i32_0 : i32, i32
  }
  func.func @transform_3(%arg0: i32) -> (i32, i32) {
    %c0_i32 = arith.constant 0 : i32
    %c0_i32_0 = arith.constant 0 : i32
    %c0_i32_1 = arith.constant 0 : i32
    return %c0_i32, %c0_i32_0 : i32, i32
  }
  func.func @transform_4(%arg0: i32) -> (i32, i32) {
    %c0_i32 = arith.constant 0 : i32
    %c0_i32_0 = arith.constant 0 : i32
    %c0_i32_1 = arith.constant 0 : i32
    return %c0_i32, %c0_i32_0 : i32, i32
  }
  func.func @transform_5(%arg0: i32) -> (i32, i32) {
    %c0_i32 = arith.constant 0 : i32
    %c0_i32_0 = arith.constant 0 : i32
    %c0_i32_1 = arith.constant 0 : i32
    return %c0_i32, %c0_i32_0 : i32, i32
  }
  func.func @transform_6(%arg0: i32) -> (i32, i32) {
    %c0_i32 = arith.constant 0 : i32
    %c0_i32_0 = arith.constant 0 : i32
    %c0_i32_1 = arith.constant 0 : i32
    return %c0_i32, %c0_i32_0 : i32, i32
  }
  func.func @transform_7(%arg0: i32) -> (i32, i32) {
    %c0_i32 = arith.constant 0 : i32
    %c0_i32_0 = arith.constant 0 : i32
    return %arg0, %c0_i32 : i32, i32
  }
}

</mosaic_0001>

<bundles_post_ra>
// kernel: qnetwork_forward.1
= control target key start
LH: loop header
LB: loop body
LE: loop exit
PB: predicated region body
PF: predicated region fallthrough
CT: control target
= control target key end

     0   :  { %s1377_s0 = inlined_call_operand.vmem [shape: bf16[128,12], index: 0, kind: input, shape index: {}]   ;;  %s1378_s1 = inlined_call_operand.vmem [shape: bf16[12,256], index: 1, kind: input, shape index: {}]   ;;  %s1379_s2 = inlined_call_operand.vmem [shape: f32[1,256], index: 2, kind: input, shape index: {}]   ;;  %s1380_s3 = inlined_call_operand.hbm [shape: bf16[256,256], index: 3, kind: input, shape index: {}]   ;;  %s1381_s4 = inlined_call_operand.vmem [shape: f32[1,256], index: 4, kind: input, shape index: {}]   ;;  %s1382_s5 = inlined_call_operand.vmem [shape: f32[1,256], index: 5, kind: input, shape index: {}]   ;;  %s1383_s6 = inlined_call_operand.<no memory space> [shape: f32[1,1], index: 6, kind: input, shape index: {}]   ;;  %s1384_s7 = inlined_call_operand.vmem [shape: f32[1,128], index: 7, kind: output, shape index: {}]  }
   0x1   :  { %v12_v0 = vstv %s1383_s6 }
   0x2   :  { %13 = vst [vmem:[#allocation2] sm:$0x1] %v12_v0 }
   0x3   :  { %14 = vsyncpa [#allocation4], 0  ;;  %s1080_s26 = smov [#allocation3]   ;;  %s1056_s30 = scalar_lea.hbm %s1380_s3, 4096 }
   0x4   :  { %s26_s27 = sshll.u32 %s1080_s26, 4  ;;  %p1057_p0 = scmp.ne.s32.totalorder %s1380_s3, %s1056_s30  ;;  %s27_s27 = int_to_ptr.vmem [resolvable:$true] %s26_s27 }
   0x5   :  { %p1060_p1 = scmp.lt.u32.totalorder %s1056_s30, %s1380_s3 }
   0x7   :  { %p1062_p2 = pnand %p1060_p1, %p1057_p0 }
   0x9   :  { %1065 = shalt.err (!%p1062_p2)
}
   0xa   :  { %s1066_s6 = scalar_lea.vmem %s27_s27, 4096  ;;  %p1071_p4 = scmp.lt.s32.totalorder %s27_s27, %s27_s27 }
   0xb   :  { %p1067_p3 = scmp.ne.s32.totalorder %s27_s27, %s1066_s6  ;;  %p1072_p5 = scmp.lt.s32.totalorder %s1066_s6, %s1066_s6 }
   0xd   :  { %p1073_p6 = por %p1072_p5, %p1071_p4 }
   0xf   :  { %p1074_p7 = pnand %p1073_p6, %p1067_p3 }
  0x11   :  { %1077 = shalt.err (!%p1074_p7)
}
  0x12   :  { %s1081_s12 = smov 128   ;;  %s1082_s13 = smov 8  }
  0x13   :  { %32 = dma.hbm_to_vmem [thread:$0]  %s1380_s3, 4096, %s27_s27, [#allocation4], %s1081_s12, %s1081_s12, %s1082_s13  }
  0x14   :  { %1078 = dma.done.wait [#allocation4], 4096  }
  0x15   :  { %1079 = vsyncadd [#allocation4], 4294963200  ;;  %v1083_v1 = vmov 0   ;;  %vm146_vm0 = vcmask 1045504   ;;  %v1000_v5 = vld [vmem:[%s1377_s0] sm:$0xff]   ;;  %vm121_vm1 = vcmask 97280   ;;  %v63_v45 = vlaneseq }
  0x16   :  { %185 = vmatprep.mubr.bf16.mxu0 %v1083_v1  ;;  %v997_v2 = vld [vmem:[%s1378_s1 + $0x4] ss:$8 sps:$4 sm:$0x3f]   ;;  %v999_v3 = vld [vmem:[%s1378_s1] ss:$8 sps:$4 sm:$0x3f]  }
  0x17   :  { %918 = vmatprep.subr.msk.bf16.mxu0 %vm146_vm0, %v997_v2  ;;  %v148_v4 = vsel %vm146_vm0, %v999_v3, 0  ;;  %v1008_v6 = vld [vmem:[#allocation3] ss:$8 sps:$4 sm:$0xff]   ;;  %v1010_v7 = vld [vmem:[#allocation3 + $0x4] ss:$8 sps:$4 sm:$0xff]   ;;  %v1003_v19 = vld [vmem:[%s1377_s0 + $0x18] sm:$0xff]  }
  0x18   :  { %154 = vmatpush1.bf16.msra.mxu0 %v148_v4  ;;  %v1001_v8 = vld [vmem:[%s1377_s0 + $0x8] sm:$0xff]   ;;  %v1013_v9 = vld [vmem:[#allocation3 + $0x14] ss:$8 sps:$4 sm:$0xff]   ;;  %959 = vmatprep.subr.bf16.mxu1 %v1010_v7  ;;  %v1011_v10 = vld [vmem:[#allocation3 + $0x10] ss:$8 sps:$4 sm:$0xff]   ;;  %v1186_v46 = vshrl.u32 %v63_v45, 7 }
  0x19   :  { %518 = vmatprep.subr.bf16.mxu0 %v1010_v7  ;;  %975 = vmatpush1.bf16.msra.mxu1 %v1008_v6  ;;  %v1016_v11 = vld [vmem:[#allocation3 + $0x24] ss:$8 sps:$4 sm:$0xff]   ;;  %v1014_v12 = vld [vmem:[#allocation3 + $0x20] ss:$8 sps:$4 sm:$0xff]   ;;  %v1019_v13 = vld [vmem:[#allocation3 + $0x34] ss:$8 sps:$4 sm:$0xff]  }
  0x1a   :  { %960 = vmatprep.subr.bf16.mxu1 %v1013_v9  ;;  %v1002_v14 = vld [vmem:[%s1377_s0 + $0x10] sm:$0xff]   ;;  %v1020_v17 = vld [vmem:[#allocation3 + $0x40] ss:$8 sps:$4 sm:$0xff]   ;;  %v1007_v39 = vld [vmem:[%s1377_s0 + $0x38] sm:$0xff]   ;;  %v1189_v47 = vsub.s32 0, %v1186_v46  ;;  %v1195_v49 = vsub.s32 1, %v1186_v46 }
  0x1b   :  { %919 = vmatmul.mubr.msk.bf16.vlgmr.msra.gmra.mrb[0].mxu0 %vm121_vm1, %v1000_v5  ;;  %v1017_v15 = vld [vmem:[#allocation3 + $0x30] ss:$8 sps:$4 sm:$0xff]   ;;  %v1022_v16 = vld [vmem:[#allocation3 + $0x44] ss:$8 sps:$4 sm:$0xff]   ;;  %v1025_v18 = vld [vmem:[#allocation3 + $0x54] ss:$8 sps:$4 sm:$0xff]  }
  0x1c   :  { %195 = vmatprep.mubr.bf16.mxu0 %v1083_v1  ;;  %519 = vmatpush1.bf16.msra.mxu0 %v1008_v6  ;;  %v1023_v20 = vld [vmem:[#allocation3 + $0x50] ss:$8 sps:$4 sm:$0xff]   ;;  %v1028_v21 = vld [vmem:[#allocation3 + $0x64] ss:$8 sps:$4 sm:$0xff]   ;;  %v1026_v22 = vld [vmem:[#allocation3 + $0x60] ss:$8 sps:$4 sm:$0xff]  }
  0x1d   :  { %520 = vmatprep.subr.bf16.mxu0 %v1013_v9  ;;  %976 = vmatpush1.bf16.msra.mxu1 %v1011_v10  ;;  %v1031_v23 = vld [vmem:[#allocation3 + $0x74] ss:$8 sps:$4 sm:$0xff]   ;;  %v1029_v25 = vld [vmem:[#allocation3 + $0x70] ss:$8 sps:$4 sm:$0xff]   ;;  %v1034_v26 = vld [vmem:[#allocation3 + $0x84] ss:$8 sps:$4 sm:$0xff]  }
  0x1e   :  { %961 = vmatprep.subr.bf16.mxu1 %v1016_v11  ;;  %v1004_v24 = vld [vmem:[%s1377_s0 + $0x20] sm:$0xff]   ;;  %v1005_v29 = vld [vmem:[%s1377_s0 + $0x28] sm:$0xff]   ;;  %v1035_v30 = vld [vmem:[#allocation3 + $0x90] ss:$8 sps:$4 sm:$0xff]   ;;  %vm801_vm2 = vcmask 130112   ;;  %vm808_vm3 = vcmask 195712  }
  0x1f   :  { %v1032_v27 = vld [vmem:[#allocation3 + $0x80] ss:$8 sps:$4 sm:$0xff]   ;;  %v1037_v28 = vld [vmem:[#allocation3 + $0x94] ss:$8 sps:$4 sm:$0xff]   ;;  %v1040_v31 = vld [vmem:[#allocation3 + $0xa4] ss:$8 sps:$4 sm:$0xff]  }
  0x20   :  { %521 = vmatpush1.bf16.msra.mxu0 %v1011_v10  ;;  %v1038_v32 = vld [vmem:[#allocation3 + $0xa0] ss:$8 sps:$4 sm:$0xff]   ;;  %v1043_v33 = vld [vmem:[#allocation3 + $0xb4] ss:$8 sps:$4 sm:$0xff]   ;;  %v1041_v35 = vld [vmem:[#allocation3 + $0xb0] ss:$8 sps:$4 sm:$0xff]  }
  0x21   :  { %522 = vmatprep.subr.bf16.mxu0 %v1016_v11  ;;  %977 = vmatpush1.bf16.msra.mxu1 %v1014_v12  ;;  %v1006_v34 = vld [vmem:[%s1377_s0 + $0x30] sm:$0xff]   ;;  %v1044_v37 = vld [vmem:[#allocation3 + $0xc0] ss:$8 sps:$4 sm:$0xff]   ;;  %vm815_vm4 = vcmask 261312   ;;  %vm822_vm5 = vcmask 326912   ;;  %vm829_vm6 = vcmask 392512  }
  0x22   :  { %962 = vmatprep.subr.bf16.mxu1 %v1019_v13  ;;  %v1046_v36 = vld [vmem:[#allocation3 + $0xc4] ss:$8 sps:$4 sm:$0xff]   ;;  %v1049_v38 = vld [vmem:[#allocation3 + $0xd4] ss:$8 sps:$4 sm:$0xff]   ;;  %v1047_v40 = vld [vmem:[#allocation3 + $0xd0] ss:$8 sps:$4 sm:$0xff]  }
  0x23   :  { %920 = vmatmul.mubr.msk.bf16.gmra.mrb[4].mxu0 %vm121_vm1, %v1001_v8  ;;  %v1052_v41 = vld [vmem:[#allocation3 + $0xe4] ss:$8 sps:$4 sm:$0xff]   ;;  %v1050_v42 = vld [vmem:[#allocation3 + $0xe0] ss:$8 sps:$4 sm:$0xff]   ;;  %v1055_v43 = vld [vmem:[#allocation3 + $0xf4] ss:$8 sps:$4 sm:$0xff]  }
  0x24   :  { %205 = vmatprep.mubr.bf16.mxu0 %v1083_v1  ;;  %523 = vmatpush1.bf16.msra.mxu0 %v1014_v12  ;;  %v1053_v44 = vld [vmem:[#allocation3 + $0xf0] ss:$8 sps:$4 sm:$0xff]   ;;  %v61_v48 = vld [vmem:[%s1379_s2] sm:$0x3]  ;;  %vm836_vm7 = vcmask 458112   ;;  %vm843_vm8 = vcmask 523712  }
  0x25   :  { %524 = vmatprep.subr.bf16.mxu0 %v1019_v13  ;;  %978 = vmatpush1.bf16.msra.mxu1 %v1017_v15  ;;  %v1198_v50 = vrot.slane %v61_v48, %v1189_v47  ;;  %v1201_v51 = vrot.slane %v61_v48, %v1195_v49  ;;  %vm850_vm9 = vcmask 589312   ;;  %vm857_vm10 = vcmask 654912  }
  0x26   :  { %963 = vmatprep.subr.bf16.mxu1 %v1022_v16  ;;  %vm864_vm11 = vcmask 720512   ;;  %vm871_vm12 = vcmask 786112   ;;  %vm878_vm13 = vcmask 851712   ;;  %vm885_vm14 = vcmask 917312  }
  0x27   :  { %vm892_vm15 = vcmask 982912   ;;  %vm899_vm0 = vcmask 1048512  }
  0x28   :  { %525 = vmatpush1.bf16.msra.mxu0 %v1017_v15 }
  0x29   :  { %526 = vmatprep.subr.bf16.mxu0 %v1022_v16  ;;  %979 = vmatpush1.bf16.msra.mxu1 %v1020_v17 }
  0x2a   :  { %964 = vmatprep.subr.bf16.mxu1 %v1025_v18 }
  0x2b   :  { %921 = vmatmul.mubr.msk.bf16.gmra.mrb[8].mxu0 %vm121_vm1, %v1002_v14 }
  0x2c   :  { %215 = vmatprep.mubr.bf16.mxu0 %v1083_v1  ;;  %527 = vmatpush1.bf16.msra.mxu0 %v1020_v17 }
  0x2d   :  { %528 = vmatprep.subr.bf16.mxu0 %v1025_v18  ;;  %980 = vmatpush1.bf16.msra.mxu1 %v1023_v20 }
  0x2e   :  { %965 = vmatprep.subr.bf16.mxu1 %v1028_v21 }
  0x30   :  { %529 = vmatpush1.bf16.msra.mxu0 %v1023_v20 }
  0x31   :  { %530 = vmatprep.subr.bf16.mxu0 %v1028_v21  ;;  %981 = vmatpush1.bf16.msra.mxu1 %v1026_v22 }
  0x32   :  { %966 = vmatprep.subr.bf16.mxu1 %v1031_v23 }
  0x33   :  { %922 = vmatmul.mubr.msk.bf16.gmra.mrb[12].mxu0 %vm121_vm1, %v1003_v19 }
  0x34   :  { %225 = vmatprep.mubr.bf16.mxu0 %v1083_v1  ;;  %531 = vmatpush1.bf16.msra.mxu0 %v1026_v22 }
  0x35   :  { %532 = vmatprep.subr.bf16.mxu0 %v1031_v23  ;;  %982 = vmatpush1.bf16.msra.mxu1 %v1029_v25 }
  0x36   :  { %967 = vmatprep.subr.bf16.mxu1 %v1034_v26 }
  0x38   :  { %533 = vmatpush1.bf16.msra.mxu0 %v1029_v25 }
  0x39   :  { %534 = vmatprep.subr.bf16.mxu0 %v1034_v26  ;;  %983 = vmatpush1.bf16.msra.mxu1 %v1032_v27 }
  0x3a   :  { %968 = vmatprep.subr.bf16.mxu1 %v1037_v28 }
  0x3b   :  { %923 = vmatmul.mubr.msk.bf16.gmra.mrb[16].mxu0 %vm121_vm1, %v1004_v24 }
  0x3c   :  { %235 = vmatprep.mubr.bf16.mxu0 %v1083_v1  ;;  %535 = vmatpush1.bf16.msra.mxu0 %v1032_v27 }
  0x3d   :  { %536 = vmatprep.subr.bf16.mxu0 %v1037_v28  ;;  %984 = vmatpush1.bf16.msra.mxu1 %v1035_v30 }
  0x3e   :  { %969 = vmatprep.subr.bf16.mxu1 %v1040_v31 }
  0x40   :  { %537 = vmatpush1.bf16.msra.mxu0 %v1035_v30 }
  0x41   :  { %538 = vmatprep.subr.bf16.mxu0 %v1040_v31  ;;  %985 = vmatpush1.bf16.msra.mxu1 %v1038_v32 }
  0x42   :  { %970 = vmatprep.subr.bf16.mxu1 %v1043_v33 }
  0x43   :  { %924 = vmatmul.mubr.msk.bf16.gmra.mrb[20].mxu0 %vm121_vm1, %v1005_v29 }
  0x44   :  { %245 = vmatprep.mubr.bf16.mxu0 %v1083_v1  ;;  %539 = vmatpush1.bf16.msra.mxu0 %v1038_v32 }
  0x45   :  { %540 = vmatprep.subr.bf16.mxu0 %v1043_v33  ;;  %986 = vmatpush1.bf16.msra.mxu1 %v1041_v35 }
  0x46   :  { %971 = vmatprep.subr.bf16.mxu1 %v1046_v36 }
  0x48   :  { %541 = vmatpush1.bf16.msra.mxu0 %v1041_v35 }
  0x49   :  { %542 = vmatprep.subr.bf16.mxu0 %v1046_v36  ;;  %987 = vmatpush1.bf16.msra.mxu1 %v1044_v37 }
  0x4a   :  { %972 = vmatprep.subr.bf16.mxu1 %v1049_v38 }
  0x4b   :  { %925 = vmatmul.mubr.msk.bf16.gmra.mrb[24].mxu0 %vm121_vm1, %v1006_v34 }
  0x4c   :  { %255 = vmatprep.mubr.bf16.mxu0 %v1083_v1  ;;  %543 = vmatpush1.bf16.msra.mxu0 %v1044_v37 }
  0x4d   :  { %544 = vmatprep.subr.bf16.mxu0 %v1049_v38  ;;  %988 = vmatpush1.bf16.msra.mxu1 %v1047_v40 }
  0x4e   :  { %973 = vmatprep.subr.bf16.mxu1 %v1052_v41 }
  0x50   :  { %545 = vmatpush1.bf16.msra.mxu0 %v1047_v40 }
  0x51   :  { %546 = vmatprep.subr.bf16.mxu0 %v1052_v41  ;;  %989 = vmatpush1.bf16.msra.mxu1 %v1050_v42 }
  0x52   :  { %974 = vmatprep.subr.bf16.mxu1 %v1055_v43 }
  0x53   :  { %926 = vmatmul.mubr.msk.bf16.gmra.mrb[28].mxu0 %vm121_vm1, %v1007_v39 }
  0x54   :  { %547 = vmatpush1.bf16.msra.mxu0 %v1050_v42 }
  0x55   :  { %548 = vmatprep.subr.bf16.mxu0 %v1055_v43  ;;  %990 = vmatpush1.bf16.msra.mxu1 %v1053_v44 }
  0x58   :  { %549 = vmatpush1.bf16.msra.mxu0 %v1053_v44 }
  0xee   :  { %v187_v52 = vpop.f32.mrb[0].mxu0 }
  0xef   :  { %v188_v53 = vadd.f32 %v187_v52, %v1198_v50  ;;  %v189_v54 = vpop.f32.mrb[1].mxu0 }
  0xf0   :  { %v190_v55 = vadd.f32 %v189_v54, %v1201_v51  ;;  %v191_v56 = vpop.f32.mrb[2].mxu0 }
  0xf1   :  { %v192_v57 = vadd.f32 %v191_v56, %v1198_v50  ;;  %v193_v58 = vpop.f32.mrb[3].mxu0  ;;  %v266_v60 = vmax.f32 %v188_v53, 0.0 }
  0xf2   :  { %v194_v59 = vadd.f32 %v193_v58, %v1201_v51  ;;  %v267_v62 = vmax.f32 %v190_v55, 0.0 }
  0xf3   :  { %v268_v61 = vmax.f32 %v192_v57, 0.0 }
  0xf4   :  { %v269_v63 = vmax.f32 %v194_v59, 0.0 }
  0xf5   :  { %v298_v0 = vpack.c.bf16 %v268_v61, %v266_v60 }
  0xf6   :  { %v299_v1 = vpack.c.bf16 %v269_v63, %v267_v62  ;;  %v197_v2 = vpop.f32.mrb[4].mxu0 }
  0xf7   :  { %v198_v3 = vadd.f32 %v197_v2, %v1198_v50  ;;  %v199_v4 = vpop.f32.mrb[5].mxu0 }
  0xf8   :  { %v200_v5 = vadd.f32 %v199_v4, %v1201_v51  ;;  %v201_v6 = vpop.f32.mrb[6].mxu0  ;;  %550 = vmatprep.mubr.bf16.mxu0 %v299_v1 }
  0xf9   :  { %v202_v7 = vadd.f32 %v201_v6, %v1198_v50  ;;  %v203_v8 = vpop.f32.mrb[7].mxu0  ;;  %551 = vmatmul.mubr.bf16.vlgmr.msra.gmra.mrb[32].mxu0 %v298_v0  ;;  %v270_v10 = vmax.f32 %v198_v3, 0.0 }
  0xfa   :  { %v204_v9 = vadd.f32 %v203_v8, %v1201_v51  ;;  %v271_v12 = vmax.f32 %v200_v5, 0.0 }
  0xfb   :  { %v272_v11 = vmax.f32 %v202_v7, 0.0 }
  0xfc   :  { %v273_v13 = vmax.f32 %v204_v9, 0.0 }
  0xfd   :  { %v300_v14 = vpack.c.bf16 %v272_v11, %v270_v10 }
  0xfe   :  { %v301_v15 = vpack.c.bf16 %v273_v13, %v271_v12  ;;  %v207_v16 = vpop.f32.mrb[8].mxu0 }
  0xff   :  { %v208_v17 = vadd.f32 %v207_v16, %v1198_v50  ;;  %v209_v18 = vpop.f32.mrb[9].mxu0 }
 0x100   :  { %v210_v19 = vadd.f32 %v209_v18, %v1201_v51  ;;  %v211_v20 = vpop.f32.mrb[10].mxu0  ;;  %560 = vmatprep.mubr.bf16.mxu0 %v301_v15 }
 0x101   :  { %v212_v21 = vadd.f32 %v211_v20, %v1198_v50  ;;  %v213_v22 = vpop.f32.mrb[11].mxu0  ;;  %561 = vmatmul.mubr.bf16.gmra.mrb[36].mxu0 %v300_v14  ;;  %v274_v24 = vmax.f32 %v208_v17, 0.0 }
 0x102   :  { %v214_v23 = vadd.f32 %v213_v22, %v1201_v51  ;;  %v275_v26 = vmax.f32 %v210_v19, 0.0 }
 0x103   :  { %v276_v25 = vmax.f32 %v212_v21, 0.0 }
 0x104   :  { %v277_v27 = vmax.f32 %v214_v23, 0.0 }
 0x105   :  { %v302_v28 = vpack.c.bf16 %v276_v25, %v274_v24 }
 0x106   :  { %v303_v29 = vpack.c.bf16 %v277_v27, %v275_v26  ;;  %v217_v30 = vpop.f32.mrb[12].mxu0 }
 0x107   :  { %v218_v31 = vadd.f32 %v217_v30, %v1198_v50  ;;  %v219_v32 = vpop.f32.mrb[13].mxu0 }
 0x108   :  { %v220_v33 = vadd.f32 %v219_v32, %v1201_v51  ;;  %v221_v34 = vpop.f32.mrb[14].mxu0  ;;  %570 = vmatprep.mubr.bf16.mxu0 %v303_v29 }
 0x109   :  { %v222_v35 = vadd.f32 %v221_v34, %v1198_v50  ;;  %v223_v36 = vpop.f32.mrb[15].mxu0  ;;  %571 = vmatmul.mubr.bf16.gmra.mrb[40].mxu0 %v302_v28  ;;  %v278_v38 = vmax.f32 %v218_v31, 0.0 }
 0x10a   :  { %v224_v37 = vadd.f32 %v223_v36, %v1201_v51  ;;  %v279_v40 = vmax.f32 %v220_v33, 0.0 }
 0x10b   :  { %v280_v39 = vmax.f32 %v222_v35, 0.0 }
 0x10c   :  { %v281_v41 = vmax.f32 %v224_v37, 0.0 }
 0x10d   :  { %v304_v42 = vpack.c.bf16 %v280_v39, %v278_v38 }
 0x10e   :  { %v227_v43 = vpop.f32.mrb[16].mxu0  ;;  %v305_v44 = vpack.c.bf16 %v281_v41, %v279_v40 }
 0x10f   :  { %v228_v48 = vadd.f32 %v227_v43, %v1198_v50  ;;  %v229_v52 = vpop.f32.mrb[17].mxu0  ;;  %v346_v43 = vld [vmem:[%s1381_s4] sm:$0x3] }
 0x110   :  { %v230_v53 = vadd.f32 %v229_v52, %v1201_v51  ;;  %v231_v54 = vpop.f32.mrb[18].mxu0  ;;  %580 = vmatprep.mubr.bf16.mxu1 %v305_v44  ;;  %v1242_v44 = vrot.slane %v346_v43, %v1195_v49 }
 0x111   :  { %v232_v55 = vadd.f32 %v231_v54, %v1198_v50  ;;  %v233_v56 = vpop.f32.mrb[19].mxu0  ;;  %581 = vmatmul.mubr.bf16.vlgmr.msra.gmra.mrb[0].mxu1 %v304_v42  ;;  %v282_v58 = vmax.f32 %v228_v48, 0.0  ;;  %v755_v42 = vld [vmem:[#allocation2] sm:$0x1] }
 0x112   :  { %v234_v57 = vadd.f32 %v233_v56, %v1201_v51  ;;  %v283_v60 = vmax.f32 %v230_v53, 0.0  ;;  %991 = vpush %v755_v42 }
 0x113   :  { %v284_v59 = vmax.f32 %v232_v55, 0.0 }
 0x114   :  { %v285_v61 = vmax.f32 %v234_v57, 0.0 }
 0x115   :  { %v306_v62 = vpack.c.bf16 %v284_v59, %v282_v58 }
 0x116   :  { %v307_v63 = vpack.c.bf16 %v285_v61, %v283_v60  ;;  %v237_v0 = vpop.f32.mrb[20].mxu0 }
 0x117   :  { %v238_v1 = vadd.f32 %v237_v0, %v1198_v50  ;;  %v239_v2 = vpop.f32.mrb[21].mxu0 }
 0x118   :  { %v240_v3 = vadd.f32 %v239_v2, %v1201_v51  ;;  %v241_v4 = vpop.f32.mrb[22].mxu0  ;;  %590 = vmatprep.mubr.bf16.mxu1 %v307_v63 }
 0x119   :  { %v242_v5 = vadd.f32 %v241_v4, %v1198_v50  ;;  %v243_v6 = vpop.f32.mrb[23].mxu0  ;;  %591 = vmatmul.mubr.bf16.gmra.mrb[4].mxu1 %v306_v62  ;;  %v286_v8 = vmax.f32 %v238_v1, 0.0 }
 0x11a   :  { %v244_v7 = vadd.f32 %v243_v6, %v1201_v51  ;;  %v287_v10 = vmax.f32 %v240_v3, 0.0 }
 0x11b   :  { %v288_v9 = vmax.f32 %v242_v5, 0.0 }
 0x11c   :  { %v289_v11 = vmax.f32 %v244_v7, 0.0 }
 0x11d   :  { %v308_v12 = vpack.c.bf16 %v288_v9, %v286_v8 }
 0x11e   :  { %v309_v13 = vpack.c.bf16 %v289_v11, %v287_v10  ;;  %v247_v14 = vpop.f32.mrb[24].mxu0 }
 0x11f   :  { %v248_v15 = vadd.f32 %v247_v14, %v1198_v50  ;;  %v249_v16 = vpop.f32.mrb[25].mxu0 }
 0x120   :  { %v250_v17 = vadd.f32 %v249_v16, %v1201_v51  ;;  %v251_v18 = vpop.f32.mrb[26].mxu0  ;;  %600 = vmatprep.mubr.bf16.mxu1 %v309_v13 }
 0x121   :  { %v252_v19 = vadd.f32 %v251_v18, %v1198_v50  ;;  %v253_v20 = vpop.f32.mrb[27].mxu0  ;;  %601 = vmatmul.mubr.bf16.gmra.mrb[8].mxu1 %v308_v12  ;;  %v290_v22 = vmax.f32 %v248_v15, 0.0 }
 0x122   :  { %v254_v21 = vadd.f32 %v253_v20, %v1201_v51  ;;  %v291_v24 = vmax.f32 %v250_v17, 0.0 }
 0x123   :  { %v292_v23 = vmax.f32 %v252_v19, 0.0 }
 0x124   :  { %v293_v25 = vmax.f32 %v254_v21, 0.0 }
 0x125   :  { %v310_v26 = vpack.c.bf16 %v292_v23, %v290_v22 }
 0x126   :  { %v311_v27 = vpack.c.bf16 %v293_v25, %v291_v24  ;;  %v257_v28 = vpop.f32.mrb[28].mxu0 }
 0x127   :  { %v258_v29 = vadd.f32 %v257_v28, %v1198_v50  ;;  %v259_v30 = vpop.f32.mrb[29].mxu0 }
 0x128   :  { %v260_v31 = vadd.f32 %v259_v30, %v1201_v51  ;;  %v261_v32 = vpop.f32.mrb[30].mxu0  ;;  %610 = vmatprep.mubr.bf16.mxu1 %v311_v27 }
 0x129   :  { %v262_v33 = vadd.f32 %v261_v32, %v1198_v50  ;;  %v263_v34 = vpop.f32.mrb[31].mxu0  ;;  %611 = vmatmul.mubr.bf16.gmra.mrb[12].mxu1 %v310_v26  ;;  %v294_v36 = vmax.f32 %v258_v29, 0.0  ;;  %v1239_v50 = vrot.slane %v346_v43, %v1189_v47 }
 0x12a   :  { %v264_v35 = vadd.f32 %v263_v34, %v1201_v51  ;;  %v295_v38 = vmax.f32 %v260_v31, 0.0  ;;  %v663_v51 = vld [vmem:[%s1382_s5] sm:$0x3] }
 0x12b   :  { %v296_v37 = vmax.f32 %v262_v33, 0.0  ;;  %v1249_v54 = vrot.slane %v663_v51, %v1189_v47  ;;  %v1253_v57 = vrot.slane %v663_v51, %v1195_v49 }
 0x12c   :  { %v297_v39 = vmax.f32 %v264_v35, 0.0 }
 0x12d   :  { %v312_v40 = vpack.c.bf16 %v296_v37, %v294_v36 }
 0x12e   :  { %v313_v41 = vpack.c.bf16 %v297_v39, %v295_v38 }
 0x130   :  { %620 = vmatprep.mubr.bf16.mxu1 %v313_v41 }
 0x131   :  { %621 = vmatmul.mubr.bf16.gmra.mrb[16].mxu1 %v312_v40 }
 0x143   :  { %s992_s4 = spop %991 }
 0x1cc   :  { %v552_v48 = vpop.f32.mrb[32].mxu0 }
 0x1cd   :  { %v553_v52 = vadd.f32 %v552_v48, %v1239_v50  ;;  %v554_v53 = vpop.f32.mrb[33].mxu0 }
 0x1ce   :  { %v555_v55 = vadd.f32 %v554_v53, %v1242_v44  ;;  %v556_v56 = vpop.f32.mrb[34].mxu0 }
 0x1cf   :  { %v631_v58 = vmax.f32 %v553_v52, 0.0  ;;  %v557_v59 = vadd.f32 %v556_v56, %v1239_v50  ;;  %v558_v60 = vpop.f32.mrb[35].mxu0 }
 0x1d0   :  { %v632_v61 = vmax.f32 %v555_v55, 0.0  ;;  %v559_v62 = vadd.f32 %v558_v60, %v1242_v44 }
 0x1d1   :  { %v633_v63 = vmax.f32 %v557_v59, 0.0  ;;  %v675_v0 = vmul.f32 %v1249_v54, %v631_v58 }
 0x1d2   :  { %v634_v1 = vmax.f32 %v559_v62, 0.0  ;;  %v676_v47 = vmul.f32 %v1253_v57, %v632_v61 }
 0x1d3   :  { %v677_v2 = vmul.f32 %v1249_v54, %v633_v63 }
 0x1d4   :  { %v678_v3 = vmul.f32 %v1253_v57, %v634_v1  ;;  %v562_v4 = vpop.f32.mrb[36].mxu0  ;;  %v707_v49 = vadd.f32 %v676_v47, %v675_v0 }
 0x1d5   :  { %v563_v5 = vadd.f32 %v562_v4, %v1239_v50  ;;  %v564_v6 = vpop.f32.mrb[37].mxu0 }
 0x1d6   :  { %v565_v7 = vadd.f32 %v564_v6, %v1242_v44  ;;  %v566_v8 = vpop.f32.mrb[38].mxu0  ;;  %708 = vadd.xlane.f32.xlu0 %v707_v49  ;;  %v710_v9 = vadd.f32 %v678_v3, %v677_v2 }
 0x1d7   :  { %v635_v10 = vmax.f32 %v563_v5, 0.0  ;;  %v567_v11 = vadd.f32 %v566_v8, %v1239_v50  ;;  %v568_v12 = vpop.f32.mrb[39].mxu0 }
 0x1d8   :  { %v636_v13 = vmax.f32 %v565_v7, 0.0  ;;  %v569_v14 = vadd.f32 %v568_v12, %v1242_v44 }
 0x1d9   :  { %v637_v15 = vmax.f32 %v567_v11, 0.0  ;;  %v679_v16 = vmul.f32 %v1249_v54, %v635_v10 }
 0x1da   :  { %v638_v17 = vmax.f32 %v569_v14, 0.0  ;;  %711 = vadd.xlane.f32.xlu0 %v710_v9  ;;  %v680_v18 = vmul.f32 %v1253_v57, %v636_v13 }
 0x1db   :  { %v681_v19 = vmul.f32 %v1249_v54, %v637_v15 }
 0x1dc   :  { %v682_v20 = vmul.f32 %v1253_v57, %v638_v17  ;;  %v572_v21 = vpop.f32.mrb[40].mxu0  ;;  %v713_v22 = vadd.f32 %v680_v18, %v679_v16 }
 0x1dd   :  { %v573_v23 = vadd.f32 %v572_v21, %v1239_v50  ;;  %v574_v24 = vpop.f32.mrb[41].mxu0 }
 0x1de   :  { %v575_v25 = vadd.f32 %v574_v24, %v1242_v44  ;;  %v576_v26 = vpop.f32.mrb[42].mxu0  ;;  %714 = vadd.xlane.f32.xlu1 %v713_v22  ;;  %v716_v27 = vadd.f32 %v682_v20, %v681_v19 }
 0x1df   :  { %v639_v28 = vmax.f32 %v573_v23, 0.0  ;;  %v577_v29 = vadd.f32 %v576_v26, %v1239_v50  ;;  %v578_v30 = vpop.f32.mrb[43].mxu0 }
 0x1e0   :  { %v640_v31 = vmax.f32 %v575_v25, 0.0  ;;  %v579_v32 = vadd.f32 %v578_v30, %v1242_v44 }
 0x1e1   :  { %v683_v33 = vmul.f32 %v1249_v54, %v639_v28  ;;  %v641_v34 = vmax.f32 %v577_v29, 0.0 }
 0x1e2   :  { %v684_v35 = vmul.f32 %v1253_v57, %v640_v31  ;;  %v642_v36 = vmax.f32 %v579_v32, 0.0  ;;  %717 = vadd.xlane.f32.xlu1 %v716_v27 }
 0x1e3   :  { %v685_v37 = vmul.f32 %v1249_v54, %v641_v34 }
 0x1e4   :  { %v686_v38 = vmul.f32 %v1253_v57, %v642_v36  ;;  %v582_v39 = vpop.f32.mrb[0].mxu1  ;;  %v719_v40 = vadd.f32 %v684_v35, %v683_v33 }
 0x1e5   :  { %v583_v41 = vadd.f32 %v582_v39, %v1239_v50  ;;  %v584_v42 = vpop.f32.mrb[1].mxu1 }
 0x1e6   :  { %v585_v43 = vadd.f32 %v584_v42, %v1242_v44  ;;  %v586_v51 = vpop.f32.mrb[2].mxu1  ;;  %720 = vadd.xlane.f32.xlu0 %v719_v40  ;;  %v722_v48 = vadd.f32 %v686_v38, %v685_v37 }
 0x1e7   :  { %v643_v52 = vmax.f32 %v583_v41, 0.0  ;;  %v587_v53 = vadd.f32 %v586_v51, %v1239_v50  ;;  %v588_v55 = vpop.f32.mrb[3].mxu1 }
 0x1e8   :  { %v644_v56 = vmax.f32 %v585_v43, 0.0  ;;  %v589_v58 = vadd.f32 %v588_v55, %v1242_v44  ;;  %723 = vadd.xlane.f32.xlu1 %v722_v48 }
 0x1e9   :  { %v687_v59 = vmul.f32 %v1249_v54, %v643_v52  ;;  %v645_v60 = vmax.f32 %v587_v53, 0.0 }
 0x1ea   :  { %v688_v61 = vmul.f32 %v1253_v57, %v644_v56  ;;  %v646_v62 = vmax.f32 %v589_v58, 0.0 }
 0x1eb   :  { %v689_v63 = vmul.f32 %v1249_v54, %v645_v60 }
 0x1ec   :  { %v690_v0 = vmul.f32 %v1253_v57, %v646_v62  ;;  %v592_v1 = vpop.f32.mrb[4].mxu1  ;;  %v725_v47 = vadd.f32 %v688_v61, %v687_v59 }
 0x1ed   :  { %v593_v2 = vadd.f32 %v592_v1, %v1239_v50  ;;  %v594_v3 = vpop.f32.mrb[5].mxu1 }
 0x1ee   :  { %v595_v4 = vadd.f32 %v594_v3, %v1242_v44  ;;  %v596_v49 = vpop.f32.mrb[6].mxu1  ;;  %726 = vadd.xlane.f32.xlu0 %v725_v47  ;;  %v728_v5 = vadd.f32 %v690_v0, %v689_v63 }
 0x1ef   :  { %v647_v6 = vmax.f32 %v593_v2, 0.0  ;;  %v597_v7 = vadd.f32 %v596_v49, %v1239_v50  ;;  %v598_v8 = vpop.f32.mrb[7].mxu1 }
 0x1f0   :  { %v648_v9 = vmax.f32 %v595_v4, 0.0  ;;  %v599_v10 = vadd.f32 %v598_v8, %v1242_v44  ;;  %729 = vadd.xlane.f32.xlu1 %v728_v5 }
 0x1f1   :  { %v691_v11 = vmul.f32 %v1249_v54, %v647_v6  ;;  %v649_v12 = vmax.f32 %v597_v7, 0.0 }
 0x1f2   :  { %v692_v13 = vmul.f32 %v1253_v57, %v648_v9  ;;  %v650_v14 = vmax.f32 %v599_v10, 0.0 }
 0x1f3   :  { %v693_v15 = vmul.f32 %v1249_v54, %v649_v12 }
 0x1f4   :  { %v694_v16 = vmul.f32 %v1253_v57, %v650_v14  ;;  %v602_v17 = vpop.f32.mrb[8].mxu1  ;;  %v731_v18 = vadd.f32 %v692_v13, %v691_v11 }
 0x1f5   :  { %v603_v19 = vadd.f32 %v602_v17, %v1239_v50  ;;  %v604_v20 = vpop.f32.mrb[9].mxu1 }
 0x1f6   :  { %v605_v21 = vadd.f32 %v604_v20, %v1242_v44  ;;  %v606_v22 = vpop.f32.mrb[10].mxu1  ;;  %732 = vadd.xlane.f32.xlu0 %v731_v18  ;;  %v734_v23 = vadd.f32 %v694_v16, %v693_v15  ;;  %v1318_v16 = vand.u32 127, %v63_v45 }
 0x1f7   :  { %v651_v24 = vmax.f32 %v603_v19, 0.0  ;;  %v607_v25 = vadd.f32 %v606_v22, %v1239_v50  ;;  %v608_v26 = vpop.f32.mrb[11].mxu1 }
 0x1f8   :  { %v652_v27 = vmax.f32 %v605_v21, 0.0  ;;  %v609_v28 = vadd.f32 %v608_v26, %v1242_v44  ;;  %735 = vadd.xlane.f32.xlu1 %v734_v23  ;;  %v803_v18 = vadd.s32 4294967280, %v1318_v16  ;;  %v810_v19 = vadd.s32 4294967272, %v1318_v16 }
 0x1f9   :  { %v695_v29 = vmul.f32 %v1249_v54, %v651_v24  ;;  %v653_v30 = vmax.f32 %v607_v25, 0.0  ;;  %v817_v20 = vadd.s32 4294967264, %v1318_v16  ;;  %v794_v45 = vsub.s32 %v1318_v16, %v1186_v46 }
 0x1fa   :  { %v696_v31 = vmul.f32 %v1253_v57, %v652_v27  ;;  %v654_v32 = vmax.f32 %v609_v28, 0.0  ;;  %v806_v24 = vsub.s32 %v803_v18, %v1186_v46  ;;  %v813_v27 = vsub.s32 %v810_v19, %v1186_v46 }
 0x1fb   :  { %v697_v33 = vmul.f32 %v1249_v54, %v653_v30  ;;  %v820_v30 = vsub.s32 %v817_v20, %v1186_v46  ;;  %v880_v19 = vadd.s32 4294967192, %v1318_v16 }
 0x1fc   :  { %v698_v34 = vmul.f32 %v1253_v57, %v654_v32  ;;  %v612_v35 = vpop.f32.mrb[12].mxu1  ;;  %v737_v36 = vadd.f32 %v696_v31, %v695_v29  ;;  %v824_v29 = vadd.s32 4294967256, %v1318_v16 }
 0x1fd   :  { %v613_v37 = vadd.f32 %v612_v35, %v1239_v50  ;;  %v614_v38 = vpop.f32.mrb[13].mxu1 }
 0x1fe   :  { %v615_v39 = vadd.f32 %v614_v38, %v1242_v44  ;;  %v616_v40 = vpop.f32.mrb[14].mxu1  ;;  %738 = vadd.xlane.f32.xlu0 %v737_v36  ;;  %v740_v41 = vadd.f32 %v698_v34, %v697_v33  ;;  %v831_v33 = vadd.s32 4294967248, %v1318_v16 }
 0x1ff   :  { %v655_v42 = vmax.f32 %v613_v37, 0.0  ;;  %v617_v43 = vadd.f32 %v616_v40, %v1239_v50  ;;  %v618_v51 = vpop.f32.mrb[15].mxu1  ;;  %v838_v37 = vadd.s32 4294967240, %v1318_v16  ;;  %v827_v40 = vsub.s32 %v824_v29, %v1186_v46 }
 0x200   :  { %v656_v48 = vmax.f32 %v615_v39, 0.0  ;;  %v619_v52 = vadd.f32 %v618_v51, %v1242_v44  ;;  %741 = vadd.xlane.f32.xlu1 %v740_v41 }
 0x201   :  { %v699_v53 = vmul.f32 %v1249_v54, %v655_v42  ;;  %v657_v55 = vmax.f32 %v617_v43, 0.0  ;;  %v834_v43 = vsub.s32 %v831_v33, %v1186_v46 }
 0x202   :  { %v700_v56 = vmul.f32 %v1253_v57, %v656_v48  ;;  %v658_v58 = vmax.f32 %v619_v52, 0.0  ;;  %v845_v52 = vadd.s32 4294967232, %v1318_v16 }
 0x203   :  { %v701_v59 = vmul.f32 %v1249_v54, %v657_v55 }
 0x204   :  { %v702_v60 = vmul.f32 %v1253_v57, %v658_v58  ;;  %v622_v61 = vpop.f32.mrb[16].mxu1  ;;  %v743_v62 = vadd.f32 %v700_v56, %v699_v53  ;;  %v841_v58 = vsub.s32 %v838_v37, %v1186_v46 }
 0x205   :  { %v623_v63 = vadd.f32 %v622_v61, %v1239_v50  ;;  %v624_v0 = vpop.f32.mrb[17].mxu1 }
 0x206   :  { %v625_v1 = vadd.f32 %v624_v0, %v1242_v44  ;;  %v626_v47 = vpop.f32.mrb[18].mxu1  ;;  %744 = vadd.xlane.f32.xlu0 %v743_v62  ;;  %v746_v2 = vadd.f32 %v702_v60, %v701_v59  ;;  %v852_v59 = vadd.s32 4294967224, %v1318_v16 }
 0x207   :  { %v659_v3 = vmax.f32 %v623_v63, 0.0  ;;  %v627_v4 = vadd.f32 %v626_v47, %v1239_v50  ;;  %v628_v49 = vpop.f32.mrb[19].mxu1  ;;  %v859_v63 = vadd.s32 4294967216, %v1318_v16  ;;  %v848_v47 = vsub.s32 %v845_v52, %v1186_v46 }
 0x208   :  { %v660_v5 = vmax.f32 %v625_v1, 0.0  ;;  %v629_v6 = vadd.f32 %v628_v49, %v1242_v44  ;;  %747 = vadd.xlane.f32.xlu1 %v746_v2  ;;  %v796_v44 = vadd.s32 4294967288, %v1318_v16  ;;  %v855_v49 = vsub.s32 %v852_v59, %v1186_v46 }
 0x209   :  { %v703_v7 = vmul.f32 %v1249_v54, %v659_v3  ;;  %v661_v8 = vmax.f32 %v627_v4, 0.0 }
 0x20a   :  { %v704_v9 = vmul.f32 %v1253_v57, %v660_v5  ;;  %v662_v10 = vmax.f32 %v629_v6, 0.0  ;;  %v799_v21 = vsub.s32 %v796_v44, %v1186_v46  ;;  %v866_v5 = vadd.s32 4294967208, %v1318_v16 }
 0x20b   :  { %v705_v11 = vmul.f32 %v1249_v54, %v661_v8  ;;  %v1323_v54 = vstv %s992_s4 }
 0x20c   :  { %v706_v12 = vmul.f32 %v1253_v57, %v662_v10  ;;  %v749_v13 = vadd.f32 %v704_v9, %v703_v7  ;;  %v862_v9 = vsub.s32 %v859_v63, %v1186_v46 }
 0x20e   :  { %750 = vadd.xlane.f32.xlu0 %v749_v13  ;;  %v752_v14 = vadd.f32 %v706_v12, %v705_v11 }
 0x210   :  { %753 = vadd.xlane.f32.xlu1 %v752_v14  ;;  %v873_v14 = vadd.s32 4294967200, %v1318_v16 }
 0x263   :  { %v709_v50 = vpop.xlane.xlu0 %708 }
 0x264   :  { %v758_v26 = vadd.f32 %v1323_v54, %v709_v50  ;;  %v869_v50 = vsub.s32 %v866_v5, %v1186_v46 }
 0x266   :  { %v795_v38 = vrot.slane %v758_v26, %v794_v45  ;;  %v887_v45 = vadd.s32 4294967184, %v1318_v16  ;;  %v883_v26 = vsub.s32 %v880_v19, %v1186_v46 }
 0x267   :  { %v712_v17 = vpop.xlane.xlu0 %711 }
 0x268   :  { %v759_v22 = vadd.f32 %v1323_v54, %v712_v17 }
 0x26a   :  { %v800_v34 = vrot.slane %v759_v22, %v799_v21  ;;  %v876_v21 = vsub.s32 %v873_v14, %v1186_v46 }
 0x26b   :  { %v715_v15 = vpop.xlane.xlu1 %714 }
 0x26c   :  { %v760_v25 = vadd.f32 %v1323_v54, %v715_v15  ;;  %v802_v53 = vsel %vm801_vm2, %v800_v34, %v795_v38 }
 0x26e   :  { %v807_v36 = vrot.slane %v760_v25, %v806_v24 }
 0x26f   :  { %v718_v57 = vpop.xlane.xlu1 %717 }
 0x270   :  { %v761_v28 = vadd.f32 %v1323_v54, %v718_v57  ;;  %v809_v56 = vsel %vm808_vm3, %v807_v36, %v802_v53 }
 0x272   :  { %v814_v39 = vrot.slane %v761_v28, %v813_v27 }
 0x273   :  { %v721_v23 = vpop.xlane.xlu0 %720 }
 0x274   :  { %v762_v31 = vadd.f32 %v1323_v54, %v721_v23  ;;  %v816_v60 = vsel %vm815_vm4, %v814_v39, %v809_v56 }
 0x275   :  { %v724_v32 = vpop.xlane.xlu1 %723 }
 0x276   :  { %v763_v41 = vadd.f32 %v1323_v54, %v724_v32  ;;  %v821_v42 = vrot.slane %v762_v31, %v820_v30  ;;  %v894_v30 = vadd.s32 4294967176, %v1318_v16  ;;  %v890_v31 = vsub.s32 %v887_v45, %v1186_v46 }
 0x278   :  { %v828_v61 = vrot.slane %v763_v41, %v827_v40  ;;  %v823_v0 = vsel %vm822_vm5, %v821_v42, %v816_v60  ;;  %v897_v37 = vsub.s32 %v894_v30, %v1186_v46 }
 0x27a   :  { %v830_v6 = vsel %vm829_vm6, %v828_v61, %v823_v0 }
 0x27b   :  { %v727_v35 = vpop.xlane.xlu0 %726 }
 0x27c   :  { %v764_v51 = vadd.f32 %v1323_v54, %v727_v35 }
 0x27d   :  { %v730_v48 = vpop.xlane.xlu1 %729 }
 0x27e   :  { %v765_v62 = vadd.f32 %v1323_v54, %v730_v48  ;;  %v835_v1 = vrot.slane %v764_v51, %v834_v43 }
 0x280   :  { %v842_v7 = vrot.slane %v765_v62, %v841_v58  ;;  %v837_v10 = vsel %vm836_vm7, %v835_v1, %v830_v6 }
 0x282   :  { %v844_v15 = vsel %vm843_vm8, %v842_v7, %v837_v10 }
 0x283   :  { %v733_v55 = vpop.xlane.xlu0 %732 }
 0x284   :  { %v766_v2 = vadd.f32 %v1323_v54, %v733_v55 }
 0x285   :  { %v736_v3 = vpop.xlane.xlu1 %735 }
 0x286   :  { %v767_v8 = vadd.f32 %v1323_v54, %v736_v3  ;;  %v849_v11 = vrot.slane %v766_v2, %v848_v47 }
 0x288   :  { %v856_v44 = vrot.slane %v767_v8, %v855_v49  ;;  %v851_v57 = vsel %vm850_vm9, %v849_v11, %v844_v15 }
 0x28a   :  { %v858_v24 = vsel %vm857_vm10, %v856_v44, %v851_v57 }
 0x28b   :  { %v739_v4 = vpop.xlane.xlu0 %738 }
 0x28c   :  { %v768_v12 = vadd.f32 %v1323_v54, %v739_v4 }
 0x28d   :  { %v742_v13 = vpop.xlane.xlu1 %741 }
 0x28e   :  { %v769_v17 = vadd.f32 %v1323_v54, %v742_v13  ;;  %v863_v20 = vrot.slane %v768_v12, %v862_v9 }
 0x290   :  { %v870_v25 = vrot.slane %v769_v17, %v869_v50  ;;  %v865_v28 = vsel %vm864_vm11, %v863_v20, %v858_v24 }
 0x292   :  { %v872_v32 = vsel %vm871_vm12, %v870_v25, %v865_v28 }
 0x293   :  { %v745_v18 = vpop.xlane.xlu0 %744 }
 0x294   :  { %v770_v22 = vadd.f32 %v1323_v54, %v745_v18 }
 0x295   :  { %v748_v23 = vpop.xlane.xlu1 %747 }
 0x296   :  { %v771_v27 = vadd.f32 %v1323_v54, %v748_v23  ;;  %v877_v29 = vrot.slane %v770_v22, %v876_v21 }
 0x298   :  { %v884_v33 = vrot.slane %v771_v27, %v883_v26  ;;  %v879_v35 = vsel %vm878_vm13, %v877_v29, %v872_v32 }
 0x29a   :  { %v886_v41 = vsel %vm885_vm14, %v884_v33, %v879_v35 }
 0x29b   :  { %v751_v34 = vpop.xlane.xlu0 %750 }
 0x29c   :  { %v772_v36 = vadd.f32 %v1323_v54, %v751_v34 }
 0x29d   :  { %v754_v38 = vpop.xlane.xlu1 %753 }
 0x29e   :  { %v891_v39 = vrot.slane %v772_v36, %v890_v31  ;;  %v773_v40 = vadd.f32 %v1323_v54, %v754_v38 }
 0x2a0   :  { %v893_v16 = vsel %vm892_vm15, %v891_v39, %v886_v41  ;;  %v898_v42 = vrot.slane %v773_v40, %v897_v37 }
 0x2a2   :  { %v900_v43 = vsel %vm899_vm0, %v898_v42, %v893_v16 }
 0x2a3   :  { %902 = vst [vmem:[%s1384_s7] sm:$0x1] %v900_v43 }
 0x2a4   :  { %907 = vsyncpa [#allocation4], 1 }

</bundles_post_ra>
